<compile_context>
chip_gen: v7x
topology: tpu7x:2x2x1
jax: 0.10.0
libtpu: 0.0.40
codegen_flags: <defaults>
</compile_context>

<pallas_src>
import jax
import jax.numpy as jnp
from jax.experimental import pallas as pl
from jax.experimental.pallas import tpu as pltpu

LANES = 128   # TPU lane width
K_CONV = 5    # Conv1d kernel size in the module


def _round_up(v, m):
    return (v + m - 1) // m * m


def _leaky_relu(x, slope=0.2):
    return jnp.where(x > 0, x, slope * x)


# ----------------------------------------------------------------------------
# Packed-parameter layout: one (rows, 128) f32 buffer, every block starts on a
# sublane-aligned (multiple-of-8) row so in-kernel slices need no relayout.
# ----------------------------------------------------------------------------
def build_layout(in_dim, hdim, n_conv, T):
    off = 0
    conv = []
    cin = in_dim
    for _ in range(n_conv):
        stride = _round_up(cin, 8)          # rows per conv tap
        w_off = off
        off += K_CONV * stride
        b_off = off
        off += 8
        conv.append(dict(w_off=w_off, b_off=b_off, cin=cin, cout=hdim, stride=stride))
        cin = hdim
    h_stride = _round_up(hdim, 8)
    fc1_w = off; off += T * h_stride
    fc1_b = off; off += 8
    fc2_w = off; off += h_stride
    fc2_b = off; off += 8
    return dict(conv=conv, fc1_w=fc1_w, fc1_b=fc1_b, fc1_stride=h_stride,
                fc2_w=fc2_w, fc2_b=fc2_b, rows=_round_up(off, 8))


def pack_params(layout, params, out_dim):
    """Pack all weights/biases into a single lane-padded f32 buffer."""
    P = jnp.zeros((layout["rows"], LANES), dtype=jnp.float32)
    for spec, (w, b) in zip(layout["conv"], params["conv"]):
        cin, cout, stride = spec["cin"], spec["cout"], spec["stride"]
        for k in range(K_CONV):
            r = spec["w_off"] + k * stride
            P = P.at[r:r + cin, :cout].set(w[k])
        P = P.at[spec["b_off"], :cout].set(b)
    fc1_w, fc1_b = params["fc1"]
    T, hdim, _ = fc1_w.shape
    for t in range(T):
        r = layout["fc1_w"] + t * layout["fc1_stride"]
        P = P.at[r:r + hdim, :hdim].set(fc1_w[t])
    P = P.at[layout["fc1_b"], :hdim].set(fc1_b)
    fc2_w, fc2_b = params["fc2"]
    P = P.at[layout["fc2_w"]:layout["fc2_w"] + hdim, :out_dim].set(fc2_w)
    P = P.at[layout["fc2_b"], :out_dim].set(fc2_b)
    return P


# ----------------------------------------------------------------------------
# Fused kernel: conv stack + fc1 + fc2, all in one grid step per batch tile.
# ----------------------------------------------------------------------------
def _make_kernel(layout, *, hdim, matmul_dtype):
    conv_specs = layout["conv"]
    fc1_w_off, fc1_b_off = layout["fc1_w"], layout["fc1_b"]
    fc1_stride = layout["fc1_stride"]
    fc2_w_off, fc2_b_off = layout["fc2_w"], layout["fc2_b"]

    def kernel(x_ref, p_ref, o_ref):
        T, Bt, D = x_ref.shape
        # Time-major flat activations: row = t*Bt + n, channels on the lane axis.
        h = x_ref[...].reshape(T * Bt, D).astype(jnp.float32)

        # --- Conv1d(k=5, stride=1, padding=2) + LeakyReLU(0.2), per layer -----
        for spec in conv_specs:
            cin, cout = spec["cin"], spec["cout"]
            w_off, b_off, stride = spec["w_off"], spec["b_off"], spec["stride"]
            zpad = jnp.zeros((2 * Bt, cin), jnp.float32)        # 2 time steps of zeros
            hp = jnp.concatenate([zpad, h, zpad], axis=0)       # ((T+4)*Bt, cin)
            acc = jnp.zeros((T * Bt, cout), jnp.float32)
            for k in range(K_CONV):
                wk = p_ref[w_off + k * stride: w_off + k * stride + cin, 0:cout]
                hk = hp[k * Bt:(k + T) * Bt, :]                 # sublane-aligned shift
                acc = acc + jnp.dot(hk.astype(matmul_dtype), wk.astype(matmul_dtype),
                                    preferred_element_type=jnp.float32)
            acc = acc + p_ref[b_off:b_off + 1, 0:cout]
            h = _leaky_relu(acc)

        # --- fc1: Linear(hdim*T, hdim) + LeakyReLU, as sum_t h_t @ W3_t -------
        acc = jnp.zeros((Bt, hdim), jnp.float32)
        for t in range(T):
            r = fc1_w_off + t * fc1_stride
            w3t = p_ref[r:r + hdim, 0:hdim]
            ht = h[t * Bt:(t + 1) * Bt, :]
            acc = acc + jnp.dot(ht.astype(matmul_dtype), w3t.astype(matmul_dtype),
                                preferred_element_type=jnp.float32)
        acc = acc + p_ref[fc1_b_off:fc1_b_off + 1, 0:hdim]
        h = _leaky_relu(acc)

        # --- fc2: Linear(hdim, out) on a lane-dense (128-wide) output ---------
        w4 = p_ref[fc2_w_off:fc2_w_off + hdim, :]               # (hdim, 128), zero-padded cols
        y = jnp.dot(h.astype(matmul_dtype), w4.astype(matmul_dtype),
                    preferred_element_type=jnp.float32)
        y = y + p_ref[fc2_b_off:fc2_b_off + 1, :]
        o_ref[...] = y.astype(o_ref.dtype)

    return kernel


def convnet_forward(x, packed, layout, *, hdim, out_dim, tile_b=128,
                    matmul_dtype=jnp.float32):
    """x: (N, T, D) f32. Returns (N, out_dim) f32."""
    N, T, D = x.shape
    assert D <= LANES and hdim <= LANES and out_dim <= LANES

    tile_b = min(tile_b, _round_up(N, 8))       # keep batch tile a multiple of 8
    pN = _round_up(N, tile_b)
    xp = x if pN == N else jnp.zeros((pN, T, D), x.dtype).at[:N].set(x)
    xt = jnp.transpose(xp, (1, 0, 2))           # (T, pN, D): time-major, batch on sublanes

    kernel = _make_kernel(layout, hdim=hdim, matmul_dtype=matmul_dtype)
    rows = layout["rows"]

    y = pl.pallas_call(
        kernel,
        out_shape=jax.ShapeDtypeStruct((pN, LANES), jnp.float32),
        grid=(pN // tile_b,),
        in_specs=[
            pl.BlockSpec((T, tile_b, D), lambda i: (0, i, 0)),   # batch-tiled input
            pl.BlockSpec((rows, LANES), lambda i: (0, 0)),       # resident packed params
        ],
        out_specs=pl.BlockSpec((tile_b, LANES), lambda i: (i, 0)),  # lane-dense output
        compiler_params=pltpu.CompilerParams(
            dimension_semantics=("parallel",),   # batch tiles shard across TCs on v7x
        ),
    )(xt, packed)
    return y[:N, :out_dim]


# ----------------------------------------------------------------------------
# Synthetic parameters + pure-JAX reference (same math, same weight layout).
# ----------------------------------------------------------------------------
def init_params(key, in_dim, hdim, n_conv, T, out_dim, scale=0.1):
    ks = iter(jax.random.split(key, 2 * n_conv + 4))
    conv = []
    cin = in_dim
    for _ in range(n_conv):
        w = scale * jax.random.normal(next(ks), (K_CONV, cin, hdim), dtype=jnp.float32)
        b = scale * jax.random.normal(next(ks), (hdim,), dtype=jnp.float32)
        conv.append((w, b))
        cin = hdim
    fc1_w = scale * jax.random.normal(next(ks), (T, hdim, hdim), dtype=jnp.float32)
    fc1_b = scale * jax.random.normal(next(ks), (hdim,), dtype=jnp.float32)
    fc2_w = scale * jax.random.normal(next(ks), (hdim, out_dim), dtype=jnp.float32)
    fc2_b = scale * jax.random.normal(next(ks), (out_dim,), dtype=jnp.float32)
    return dict(conv=conv, fc1=(fc1_w, fc1_b), fc2=(fc2_w, fc2_b))


def reference_forward(x, params):
    hi = jax.lax.Precision.HIGHEST
    N, T, D = x.shape
    h = x                                                    # (N, T, C) channels-last
    for (w, b) in params["conv"]:
        hp = jnp.pad(h, ((0, 0), (2, 2), (0, 0)))
        acc = jnp.zeros((N, T, w.shape[2]), jnp.float32)
        for k in range(K_CONV):
            acc = acc + jnp.einsum("ntc,co->nto", hp[:, k:k + T, :], w[k], precision=hi)
        h = _leaky_relu(acc + b)
    fc1_w, fc1_b = params["fc1"]
    y = jnp.einsum("ntc,tco->no", h, fc1_w, precision=hi) + fc1_b   # == Linear(H*T, H)
    y = _leaky_relu(y)
    fc2_w, fc2_b = params["fc2"]
    return jnp.dot(y, fc2_w, precision=hi) + fc2_b


if __name__ == "__main__":
    # args: t_dim=8, h_dim=32, n_hid=3 (-> 2 conv layers), default atype (LeakyReLU),
    #       input_size=16, output_size=4; batch N=4.
    N, T, D = 4, 8, 16
    HDIM, N_HID, OUT = 32, 3, 4
    n_conv = N_HID - 1

    key = jax.random.PRNGKey(0)
    kx, kp = jax.random.split(key)
    x = jax.random.normal(kx, (N, T, D), dtype=jnp.float32)
    params = init_params(kp, D, HDIM, n_conv, T, OUT)

    layout = build_layout(D, HDIM, n_conv, T)
    packed = pack_params(layout, params, OUT)

    # On v5e, pass matmul_dtype=jnp.bfloat16 (accumulation stays f32 on the MXU).
    y = convnet_forward(x, packed, layout, hdim=HDIM, out_dim=OUT)
    y = jax.block_until_ready(y)

    y_ref = reference_forward(x, params)
    assert y.shape == (N, OUT)
    assert jnp.allclose(y, y_ref, atol=1e-4, rtol=1e-3), \
        float(jnp.max(jnp.abs(y - y_ref)))

    print("KERNEL_OK")
</pallas_src>

<mosaic_0001>
module attributes {stable_mosaic.version = 11 : i64} {
  func.func @kernel(%arg0: i32, %arg1: memref<8x8x16xf32, #tpu.memory_space<vmem>>, %arg2: memref<560x128xf32, #tpu.memory_space<vmem>>, %arg3: memref<8x128xf32, #tpu.memory_space<vmem>>) attributes {dimension_semantics = [#tpu.dimension_semantics<parallel>], iteration_bounds = array<i64: 1>, scalar_prefetch = 0 : i64, scratch_operands = 0 : i64, tpu.core_type = #tpu.core_type<tc>, window_params = [{transform_indices = @transform_0, window_bounds = array<i64: 8, 8, 16>}, {pipeline_mode = #tpu.pipeline_mode<synchronous>, transform_indices = @transform_1, window_bounds = array<i64: 560, 128>}, {transform_indices = @transform_2, window_bounds = array<i64: 8, 128>}]} {
    %c0 = arith.constant 0 : index
    %c0_0 = arith.constant 0 : index
    %c0_1 = arith.constant 0 : index
    %0 = vector.load %arg1[%c0, %c0_0, %c0_1] : memref<8x8x16xf32, #tpu.memory_space<vmem>>, vector<8x8x16xf32>
    %1 = vector.shape_cast %0 : vector<8x8x16xf32> to vector<64x16xf32>
    %cst = arith.constant 0.000000e+00 : f32
    %2 = vector.broadcast %cst : f32 to vector<16x16xf32>
    %3 = tpu.concatenate %2, %1, %2 in 0 : vector<16x16xf32>, vector<64x16xf32>, vector<16x16xf32> -> vector<96x16xf32>
    %cst_2 = arith.constant 0.000000e+00 : f32
    %4 = vector.broadcast %cst_2 : f32 to vector<64x32xf32>
    %c0_3 = arith.constant 0 : index
    %c0_4 = arith.constant 0 : index
    %5 = vector.load %arg2[%c0_3, %c0_4] : memref<560x128xf32, #tpu.memory_space<vmem>>, vector<16x32xf32>
    %6 = vector.extract_strided_slice %3 {offsets = [0, 0], sizes = [64, 16], strides = [1, 1]} : vector<96x16xf32> to vector<64x16xf32>
    %cst_5 = arith.constant dense<0.000000e+00> : vector<64x32xf32>
    %7 = tpu.matmul %6, %5, %cst_5 {dimension_numbers = #tpu.dot_dimension_numbers<[1], [0], [0], [1], [0, 0, 1, 1], [], []>} : vector<64x16xf32>, vector<16x32xf32>, vector<64x32xf32> -> vector<64x32xf32>
    %8 = arith.addf %4, %7 : vector<64x32xf32>
    %c16 = arith.constant 16 : index
    %c0_6 = arith.constant 0 : index
    %9 = vector.load %arg2[%c16, %c0_6] : memref<560x128xf32, #tpu.memory_space<vmem>>, vector<16x32xf32>
    %10 = vector.extract_strided_slice %3 {offsets = [8, 0], sizes = [64, 16], strides = [1, 1]} : vector<96x16xf32> to vector<64x16xf32>
    %cst_7 = arith.constant dense<0.000000e+00> : vector<64x32xf32>
    %11 = tpu.matmul %10, %9, %cst_7 {dimension_numbers = #tpu.dot_dimension_numbers<[1], [0], [0], [1], [0, 0, 1, 1], [], []>} : vector<64x16xf32>, vector<16x32xf32>, vector<64x32xf32> -> vector<64x32xf32>
    %12 = arith.addf %8, %11 : vector<64x32xf32>
    %c32 = arith.constant 32 : index
    %c0_8 = arith.constant 0 : index
    %13 = vector.load %arg2[%c32, %c0_8] : memref<560x128xf32, #tpu.memory_space<vmem>>, vector<16x32xf32>
    %14 = vector.extract_strided_slice %3 {offsets = [16, 0], sizes = [64, 16], strides = [1, 1]} : vector<96x16xf32> to vector<64x16xf32>
    %cst_9 = arith.constant dense<0.000000e+00> : vector<64x32xf32>
    %15 = tpu.matmul %14, %13, %cst_9 {dimension_numbers = #tpu.dot_dimension_numbers<[1], [0], [0], [1], [0, 0, 1, 1], [], []>} : vector<64x16xf32>, vector<16x32xf32>, vector<64x32xf32> -> vector<64x32xf32>
    %16 = arith.addf %12, %15 : vector<64x32xf32>
    %c48 = arith.constant 48 : index
    %c0_10 = arith.constant 0 : index
    %17 = vector.load %arg2[%c48, %c0_10] : memref<560x128xf32, #tpu.memory_space<vmem>>, vector<16x32xf32>
    %18 = vector.extract_strided_slice %3 {offsets = [24, 0], sizes = [64, 16], strides = [1, 1]} : vector<96x16xf32> to vector<64x16xf32>
    %cst_11 = arith.constant dense<0.000000e+00> : vector<64x32xf32>
    %19 = tpu.matmul %18, %17, %cst_11 {dimension_numbers = #tpu.dot_dimension_numbers<[1], [0], [0], [1], [0, 0, 1, 1], [], []>} : vector<64x16xf32>, vector<16x32xf32>, vector<64x32xf32> -> vector<64x32xf32>
    %20 = arith.addf %16, %19 : vector<64x32xf32>
    %c64 = arith.constant 64 : index
    %c0_12 = arith.constant 0 : index
    %21 = vector.load %arg2[%c64, %c0_12] : memref<560x128xf32, #tpu.memory_space<vmem>>, vector<16x32xf32>
    %22 = vector.extract_strided_slice %3 {offsets = [32, 0], sizes = [64, 16], strides = [1, 1]} : vector<96x16xf32> to vector<64x16xf32>
    %cst_13 = arith.constant dense<0.000000e+00> : vector<64x32xf32>
    %23 = tpu.matmul %22, %21, %cst_13 {dimension_numbers = #tpu.dot_dimension_numbers<[1], [0], [0], [1], [0, 0, 1, 1], [], []>} : vector<64x16xf32>, vector<16x32xf32>, vector<64x32xf32> -> vector<64x32xf32>
    %24 = arith.addf %20, %23 : vector<64x32xf32>
    %c80 = arith.constant 80 : index
    %c0_14 = arith.constant 0 : index
    %25 = vector.load %arg2[%c80, %c0_14] : memref<560x128xf32, #tpu.memory_space<vmem>>, vector<1x32xf32>
    %26 = vector.broadcast %25 : vector<1x32xf32> to vector<64x32xf32>
    %27 = arith.addf %24, %26 : vector<64x32xf32>
    %cst_15 = arith.constant 0.000000e+00 : f32
    %28 = vector.broadcast %cst_15 : f32 to vector<64x32xf32>
    %29 = arith.cmpf ogt, %27, %28 : vector<64x32xf32>
    %cst_16 = arith.constant 2.000000e-01 : f32
    %30 = vector.broadcast %cst_16 : f32 to vector<64x32xf32>
    %31 = arith.mulf %30, %27 : vector<64x32xf32>
    %32 = arith.select %29, %27, %31 : vector<64x32xi1>, vector<64x32xf32>
    %cst_17 = arith.constant 0.000000e+00 : f32
    %33 = vector.broadcast %cst_17 : f32 to vector<16x32xf32>
    %34 = tpu.concatenate %33, %32, %33 in 0 : vector<16x32xf32>, vector<64x32xf32>, vector<16x32xf32> -> vector<96x32xf32>
    %cst_18 = arith.constant 0.000000e+00 : f32
    %35 = vector.broadcast %cst_18 : f32 to vector<64x32xf32>
    %c88 = arith.constant 88 : index
    %c0_19 = arith.constant 0 : index
    %36 = vector.load %arg2[%c88, %c0_19] : memref<560x128xf32, #tpu.memory_space<vmem>>, vector<32x32xf32>
    %37 = vector.extract_strided_slice %34 {offsets = [0, 0], sizes = [64, 32], strides = [1, 1]} : vector<96x32xf32> to vector<64x32xf32>
    %cst_20 = arith.constant dense<0.000000e+00> : vector<64x32xf32>
    %38 = tpu.matmul %37, %36, %cst_20 {dimension_numbers = #tpu.dot_dimension_numbers<[1], [0], [0], [1], [0, 0, 1, 1], [], []>} : vector<64x32xf32>, vector<32x32xf32>, vector<64x32xf32> -> vector<64x32xf32>
    %39 = arith.addf %35, %38 : vector<64x32xf32>
    %c120 = arith.constant 120 : index
    %c0_21 = arith.constant 0 : index
    %40 = vector.load %arg2[%c120, %c0_21] : memref<560x128xf32, #tpu.memory_space<vmem>>, vector<32x32xf32>
    %41 = vector.extract_strided_slice %34 {offsets = [8, 0], sizes = [64, 32], strides = [1, 1]} : vector<96x32xf32> to vector<64x32xf32>
    %cst_22 = arith.constant dense<0.000000e+00> : vector<64x32xf32>
    %42 = tpu.matmul %41, %40, %cst_22 {dimension_numbers = #tpu.dot_dimension_numbers<[1], [0], [0], [1], [0, 0, 1, 1], [], []>} : vector<64x32xf32>, vector<32x32xf32>, vector<64x32xf32> -> vector<64x32xf32>
    %43 = arith.addf %39, %42 : vector<64x32xf32>
    %c152 = arith.constant 152 : index
    %c0_23 = arith.constant 0 : index
    %44 = vector.load %arg2[%c152, %c0_23] : memref<560x128xf32, #tpu.memory_space<vmem>>, vector<32x32xf32>
    %45 = vector.extract_strided_slice %34 {offsets = [16, 0], sizes = [64, 32], strides = [1, 1]} : vector<96x32xf32> to vector<64x32xf32>
    %cst_24 = arith.constant dense<0.000000e+00> : vector<64x32xf32>
    %46 = tpu.matmul %45, %44, %cst_24 {dimension_numbers = #tpu.dot_dimension_numbers<[1], [0], [0], [1], [0, 0, 1, 1], [], []>} : vector<64x32xf32>, vector<32x32xf32>, vector<64x32xf32> -> vector<64x32xf32>
    %47 = arith.addf %43, %46 : vector<64x32xf32>
    %c184 = arith.constant 184 : index
    %c0_25 = arith.constant 0 : index
    %48 = vector.load %arg2[%c184, %c0_25] : memref<560x128xf32, #tpu.memory_space<vmem>>, vector<32x32xf32>
    %49 = vector.extract_strided_slice %34 {offsets = [24, 0], sizes = [64, 32], strides = [1, 1]} : vector<96x32xf32> to vector<64x32xf32>
    %cst_26 = arith.constant dense<0.000000e+00> : vector<64x32xf32>
    %50 = tpu.matmul %49, %48, %cst_26 {dimension_numbers = #tpu.dot_dimension_numbers<[1], [0], [0], [1], [0, 0, 1, 1], [], []>} : vector<64x32xf32>, vector<32x32xf32>, vector<64x32xf32> -> vector<64x32xf32>
    %51 = arith.addf %47, %50 : vector<64x32xf32>
    %c216 = arith.constant 216 : index
    %c0_27 = arith.constant 0 : index
    %52 = vector.load %arg2[%c216, %c0_27] : memref<560x128xf32, #tpu.memory_space<vmem>>, vector<32x32xf32>
    %53 = vector.extract_strided_slice %34 {offsets = [32, 0], sizes = [64, 32], strides = [1, 1]} : vector<96x32xf32> to vector<64x32xf32>
    %cst_28 = arith.constant dense<0.000000e+00> : vector<64x32xf32>
    %54 = tpu.matmul %53, %52, %cst_28 {dimension_numbers = #tpu.dot_dimension_numbers<[1], [0], [0], [1], [0, 0, 1, 1], [], []>} : vector<64x32xf32>, vector<32x32xf32>, vector<64x32xf32> -> vector<64x32xf32>
    %55 = arith.addf %51, %54 : vector<64x32xf32>
    %c248 = arith.constant 248 : index
    %c0_29 = arith.constant 0 : index
    %56 = vector.load %arg2[%c248, %c0_29] : memref<560x128xf32, #tpu.memory_space<vmem>>, vector<1x32xf32>
    %57 = vector.broadcast %56 : vector<1x32xf32> to vector<64x32xf32>
    %58 = arith.addf %55, %57 : vector<64x32xf32>
    %cst_30 = arith.constant 0.000000e+00 : f32
    %59 = vector.broadcast %cst_30 : f32 to vector<64x32xf32>
    %60 = arith.cmpf ogt, %58, %59 : vector<64x32xf32>
    %cst_31 = arith.constant 2.000000e-01 : f32
    %61 = vector.broadcast %cst_31 : f32 to vector<64x32xf32>
    %62 = arith.mulf %61, %58 : vector<64x32xf32>
    %63 = arith.select %60, %58, %62 : vector<64x32xi1>, vector<64x32xf32>
    %cst_32 = arith.constant 0.000000e+00 : f32
    %64 = vector.broadcast %cst_32 : f32 to vector<8x32xf32>
    %c256 = arith.constant 256 : index
    %c0_33 = arith.constant 0 : index
    %65 = vector.load %arg2[%c256, %c0_33] : memref<560x128xf32, #tpu.memory_space<vmem>>, vector<32x32xf32>
    %66 = vector.extract_strided_slice %63 {offsets = [0, 0], sizes = [8, 32], strides = [1, 1]} : vector<64x32xf32> to vector<8x32xf32>
    %cst_34 = arith.constant dense<0.000000e+00> : vector<8x32xf32>
    %67 = tpu.matmul %66, %65, %cst_34 {dimension_numbers = #tpu.dot_dimension_numbers<[1], [0], [0], [1], [0, 0, 1, 1], [], []>} : vector<8x32xf32>, vector<32x32xf32>, vector<8x32xf32> -> vector<8x32xf32>
    %68 = arith.addf %64, %67 : vector<8x32xf32>
    %c288 = arith.constant 288 : index
    %c0_35 = arith.constant 0 : index
    %69 = vector.load %arg2[%c288, %c0_35] : memref<560x128xf32, #tpu.memory_space<vmem>>, vector<32x32xf32>
    %70 = vector.extract_strided_slice %63 {offsets = [8, 0], sizes = [8, 32], strides = [1, 1]} : vector<64x32xf32> to vector<8x32xf32>
    %cst_36 = arith.constant dense<0.000000e+00> : vector<8x32xf32>
    %71 = tpu.matmul %70, %69, %cst_36 {dimension_numbers = #tpu.dot_dimension_numbers<[1], [0], [0], [1], [0, 0, 1, 1], [], []>} : vector<8x32xf32>, vector<32x32xf32>, vector<8x32xf32> -> vector<8x32xf32>
    %72 = arith.addf %68, %71 : vector<8x32xf32>
    %c320 = arith.constant 320 : index
    %c0_37 = arith.constant 0 : index
    %73 = vector.load %arg2[%c320, %c0_37] : memref<560x128xf32, #tpu.memory_space<vmem>>, vector<32x32xf32>
    %74 = vector.extract_strided_slice %63 {offsets = [16, 0], sizes = [8, 32], strides = [1, 1]} : vector<64x32xf32> to vector<8x32xf32>
    %cst_38 = arith.constant dense<0.000000e+00> : vector<8x32xf32>
    %75 = tpu.matmul %74, %73, %cst_38 {dimension_numbers = #tpu.dot_dimension_numbers<[1], [0], [0], [1], [0, 0, 1, 1], [], []>} : vector<8x32xf32>, vector<32x32xf32>, vector<8x32xf32> -> vector<8x32xf32>
    %76 = arith.addf %72, %75 : vector<8x32xf32>
    %c352 = arith.constant 352 : index
    %c0_39 = arith.constant 0 : index
    %77 = vector.load %arg2[%c352, %c0_39] : memref<560x128xf32, #tpu.memory_space<vmem>>, vector<32x32xf32>
    %78 = vector.extract_strided_slice %63 {offsets = [24, 0], sizes = [8, 32], strides = [1, 1]} : vector<64x32xf32> to vector<8x32xf32>
    %cst_40 = arith.constant dense<0.000000e+00> : vector<8x32xf32>
    %79 = tpu.matmul %78, %77, %cst_40 {dimension_numbers = #tpu.dot_dimension_numbers<[1], [0], [0], [1], [0, 0, 1, 1], [], []>} : vector<8x32xf32>, vector<32x32xf32>, vector<8x32xf32> -> vector<8x32xf32>
    %80 = arith.addf %76, %79 : vector<8x32xf32>
    %c384 = arith.constant 384 : index
    %c0_41 = arith.constant 0 : index
    %81 = vector.load %arg2[%c384, %c0_41] : memref<560x128xf32, #tpu.memory_space<vmem>>, vector<32x32xf32>
    %82 = vector.extract_strided_slice %63 {offsets = [32, 0], sizes = [8, 32], strides = [1, 1]} : vector<64x32xf32> to vector<8x32xf32>
    %cst_42 = arith.constant dense<0.000000e+00> : vector<8x32xf32>
    %83 = tpu.matmul %82, %81, %cst_42 {dimension_numbers = #tpu.dot_dimension_numbers<[1], [0], [0], [1], [0, 0, 1, 1], [], []>} : vector<8x32xf32>, vector<32x32xf32>, vector<8x32xf32> -> vector<8x32xf32>
    %84 = arith.addf %80, %83 : vector<8x32xf32>
    %c416 = arith.constant 416 : index
    %c0_43 = arith.constant 0 : index
    %85 = vector.load %arg2[%c416, %c0_43] : memref<560x128xf32, #tpu.memory_space<vmem>>, vector<32x32xf32>
    %86 = vector.extract_strided_slice %63 {offsets = [40, 0], sizes = [8, 32], strides = [1, 1]} : vector<64x32xf32> to vector<8x32xf32>
    %cst_44 = arith.constant dense<0.000000e+00> : vector<8x32xf32>
    %87 = tpu.matmul %86, %85, %cst_44 {dimension_numbers = #tpu.dot_dimension_numbers<[1], [0], [0], [1], [0, 0, 1, 1], [], []>} : vector<8x32xf32>, vector<32x32xf32>, vector<8x32xf32> -> vector<8x32xf32>
    %88 = arith.addf %84, %87 : vector<8x32xf32>
    %c448 = arith.constant 448 : index
    %c0_45 = arith.constant 0 : index
    %89 = vector.load %arg2[%c448, %c0_45] : memref<560x128xf32, #tpu.memory_space<vmem>>, vector<32x32xf32>
    %90 = vector.extract_strided_slice %63 {offsets = [48, 0], sizes = [8, 32], strides = [1, 1]} : vector<64x32xf32> to vector<8x32xf32>
    %cst_46 = arith.constant dense<0.000000e+00> : vector<8x32xf32>
    %91 = tpu.matmul %90, %89, %cst_46 {dimension_numbers = #tpu.dot_dimension_numbers<[1], [0], [0], [1], [0, 0, 1, 1], [], []>} : vector<8x32xf32>, vector<32x32xf32>, vector<8x32xf32> -> vector<8x32xf32>
    %92 = arith.addf %88, %91 : vector<8x32xf32>
    %c480 = arith.constant 480 : index
    %c0_47 = arith.constant 0 : index
    %93 = vector.load %arg2[%c480, %c0_47] : memref<560x128xf32, #tpu.memory_space<vmem>>, vector<32x32xf32>
    %94 = vector.extract_strided_slice %63 {offsets = [56, 0], sizes = [8, 32], strides = [1, 1]} : vector<64x32xf32> to vector<8x32xf32>
    %cst_48 = arith.constant dense<0.000000e+00> : vector<8x32xf32>
    %95 = tpu.matmul %94, %93, %cst_48 {dimension_numbers = #tpu.dot_dimension_numbers<[1], [0], [0], [1], [0, 0, 1, 1], [], []>} : vector<8x32xf32>, vector<32x32xf32>, vector<8x32xf32> -> vector<8x32xf32>
    %96 = arith.addf %92, %95 : vector<8x32xf32>
    %c512 = arith.constant 512 : index
    %c0_49 = arith.constant 0 : index
    %97 = vector.load %arg2[%c512, %c0_49] : memref<560x128xf32, #tpu.memory_space<vmem>>, vector<1x32xf32>
    %98 = vector.broadcast %97 : vector<1x32xf32> to vector<8x32xf32>
    %99 = arith.addf %96, %98 : vector<8x32xf32>
    %cst_50 = arith.constant 0.000000e+00 : f32
    %100 = vector.broadcast %cst_50 : f32 to vector<8x32xf32>
    %101 = arith.cmpf ogt, %99, %100 : vector<8x32xf32>
    %cst_51 = arith.constant 2.000000e-01 : f32
    %102 = vector.broadcast %cst_51 : f32 to vector<8x32xf32>
    %103 = arith.mulf %102, %99 : vector<8x32xf32>
    %104 = arith.select %101, %99, %103 : vector<8x32xi1>, vector<8x32xf32>
    %c520 = arith.constant 520 : index
    %c0_52 = arith.constant 0 : index
    %105 = vector.load %arg2[%c520, %c0_52] : memref<560x128xf32, #tpu.memory_space<vmem>>, vector<32x128xf32>
    %cst_53 = arith.constant dense<0.000000e+00> : vector<8x128xf32>
    %106 = tpu.matmul %104, %105, %cst_53 {dimension_numbers = #tpu.dot_dimension_numbers<[1], [0], [0], [1], [0, 0, 1, 1], [], []>} : vector<8x32xf32>, vector<32x128xf32>, vector<8x128xf32> -> vector<8x128xf32>
    %c552 = arith.constant 552 : index
    %c0_54 = arith.constant 0 : index
    %107 = vector.load %arg2[%c552, %c0_54] : memref<560x128xf32, #tpu.memory_space<vmem>>, vector<1x128xf32>
    %108 = vector.broadcast %107 : vector<1x128xf32> to vector<8x128xf32>
    %109 = arith.addf %106, %108 : vector<8x128xf32>
    %c0_55 = arith.constant 0 : index
    %c0_56 = arith.constant 0 : index
    %110 = vector.load %arg3[%c0_55, %c0_56] : memref<8x128xf32, #tpu.memory_space<vmem>>, vector<8x128xf32>
    tpu.vector_store %arg3[%c0_55, %c0_56], %109 {strides = array<i32>} : memref<8x128xf32, #tpu.memory_space<vmem>>, vector<8x128xf32>,
    return
  }
  func.func @transform_0(%arg0: i32) -> (i32, i32, i32) {
    %c0_i32 = arith.constant 0 : i32
    %c0_i32_0 = arith.constant 0 : i32
    %c0_i32_1 = arith.constant 0 : i32
    return %c0_i32, %arg0, %c0_i32_0 : i32, i32, i32
  }
  func.func @transform_1(%arg0: i32) -> (i32, i32) {
    %c0_i32 = arith.constant 0 : i32
    %c0_i32_0 = arith.constant 0 : i32
    %c0_i32_1 = arith.constant 0 : i32
    return %c0_i32, %c0_i32_0 : i32, i32
  }
  func.func @transform_2(%arg0: i32) -> (i32, i32) {
    %c0_i32 = arith.constant 0 : i32
    %c0_i32_0 = arith.constant 0 : i32
    return %arg0, %c0_i32 : i32, i32
  }
}

</mosaic_0001>

<bundles_post_ra>
// kernel: tpu_custom_call.1
= control target key start
LH: loop header
LB: loop body
LE: loop exit
PB: predicated region body
PF: predicated region fallthrough
CT: control target
= control target key end

     0   :  { %7 = vsyncpa [#allocation3], 0  ;;  %s3052_s0 = inlined_call_operand.hbm [shape: f32[8,8,16], index: 0, kind: input, shape index: {}]   ;;  %s3053_s1 = inlined_call_operand.hbm [shape: f32[560,128], index: 1, kind: input, shape index: {}]   ;;  %s3054_s2 = inlined_call_operand.hbm [shape: f32[8,128], index: 2, kind: output, shape index: {}]  }
   0x1   :  { %8 = vsyncpa [#allocation6], 0 }
   0x2   :  { %9 = vsyncpa [#allocation4], 0  ;;  %s2808_s9 = smov [#allocation2]   ;;  %s2736_s13 = scalar_lea.hbm %s3052_s0, 1024 }
   0x3   :  { %s15_s10 = sshll.u32 %s2808_s9, 4  ;;  %p2737_p0 = scmp.ne.s32.totalorder %s3052_s0, %s2736_s13  ;;  %s16_s10 = int_to_ptr.vmem [resolvable:$true] %s15_s10 }
   0x4   :  { %p2740_p1 = scmp.lt.u32.totalorder %s2736_s13, %s3052_s0 }
   0x6   :  { %p2742_p2 = pnand %p2740_p1, %p2737_p0 }
   0x8   :  { %2745 = shalt.err (!%p2742_p2)
}
   0x9   :  { %s2746_s18 = scalar_lea.vmem %s16_s10, 1024  ;;  %p2751_p4 = scmp.lt.s32.totalorder %s16_s10, %s16_s10 }
   0xa   :  { %p2747_p3 = scmp.ne.s32.totalorder %s16_s10, %s2746_s18  ;;  %p2752_p5 = scmp.lt.s32.totalorder %s2746_s18, %s2746_s18 }
   0xc   :  { %p2753_p6 = por %p2752_p5, %p2751_p4 }
   0xe   :  { %p2754_p7 = pnand %p2753_p6, %p2747_p3 }
  0x10   :  { %2757 = shalt.err (!%p2754_p7)
}
  0x11   :  { %s2809_s19 = smov 128   ;;  %s2810_s20 = smov 8  }
  0x12   :  { %21 = dma.hbm_to_vmem [thread:$0]  %s3052_s0, 1024, %s16_s10, [#allocation3], %s2809_s19, %s2809_s19, %s2810_s20  }
  0x13   :  { %s2811_s23 = smov [#allocation5]   ;;  %s2758_s27 = scalar_lea.hbm %s3053_s1, 8960 }
  0x14   :  { %s27_s24 = sshll.u32 %s2811_s23, 4  ;;  %p2759_p8 = scmp.ne.s32.totalorder %s3053_s1, %s2758_s27  ;;  %s28_s24 = int_to_ptr.vmem [resolvable:$true] %s27_s24 }
  0x15   :  { %p2762_p9 = scmp.lt.u32.totalorder %s2758_s27, %s3053_s1 }
  0x17   :  { %p2764_p10 = pnand %p2762_p9, %p2759_p8 }
  0x19   :  { %2767 = shalt.err (!%p2764_p10)
}
  0x1a   :  { %s2768_s4 = scalar_lea.vmem %s28_s24, 8960  ;;  %p2773_p12 = scmp.lt.s32.totalorder %s28_s24, %s28_s24 }
  0x1b   :  { %p2769_p11 = scmp.ne.s32.totalorder %s28_s24, %s2768_s4  ;;  %p2774_p13 = scmp.lt.s32.totalorder %s2768_s4, %s2768_s4 }
  0x1d   :  { %p2775_p0 = por %p2774_p13, %p2773_p12 }
  0x1f   :  { %p2776_p1 = pnand %p2775_p0, %p2769_p11 }
  0x21   :  { %2779 = shalt.err (!%p2776_p1)
}
  0x22   :  { %33 = dma.hbm_to_vmem [thread:$0]  %s3053_s1, 8960, %s28_s24, [#allocation6], %s2809_s19, %s2809_s19, %s2810_s20  }
  0x23   :  { %2802 = dma.done.wait [#allocation3], 1024  }
  0x24   :  { %2803 = vsyncadd [#allocation3], 4294966272 }
  0x25   :  { %2804 = dma.done.wait [#allocation6], 8960  }
  0x26   :  { %2805 = vsyncadd [#allocation6], 4294958336  ;;  %v2812_v0 = vmov 0.0   ;;  %v50_v1 = vld [vmem:[#allocation5 + $0x10] sm:$0xff]  ;;  %v51_v2 = vld [vmem:[#allocation5 + $0x18] sm:$0xff]  ;;  %vm52_vm0 = vcmask 130048  }
  0x27   :  { %2275 = vmatprep.mubr.f32.mxu0 %v2812_v0  ;;  %2359 = vmatprep.mubr.f32.mxu1 %v2812_v0  ;;  %v2550_v3 = vpack.c.bf16 %v51_v2, %v50_v1  ;;  %v48_v4 = vld [vmem:[#allocation5] sm:$0xff]  ;;  %v49_v5 = vld [vmem:[#allocation5 + $0x8] sm:$0xff]  ;;  %v676_v12 = vld [vmem:[#allocation5 + $0x78] sm:$0xff]  ;;  %v2813_v35 = vmov 0.0|0.0   ;;  %vm680_vm3 = vcmask 261120   ;;  %vm2814_vm10 = vmmov 0  }
  0x28   :  { %v2554_v6 = vpack.c.bf16 %v49_v5, %v48_v4  ;;  %v287_v7 = vld [vmem:[#allocation5 + $0x20] sm:$0xff]  ;;  %v288_v9 = vld [vmem:[#allocation5 + $0x28] sm:$0xff]  ;;  %v42_v15 = vld [vmem:[#allocation2 + $0x10] sm:$0xff]  ;;  %s2815_s1 = smov [#allocation7]  }
  0x29   :  { %2551 = vmatprep.subr.bf16.mxu0 %v2550_v3  ;;  %v40_v8 = vld [vmem:[#allocation2] sm:$0xff]  ;;  %v41_v10 = vld [vmem:[#allocation2 + $0x8] sm:$0xff]  ;;  %v2558_v11 = vpack.c.bf16 %v288_v9, %v287_v7  ;;  %v43_v16 = vld [vmem:[#allocation2 + $0x18] sm:$0xff]  ;;  %s2025_s6 = sshll.u32 %s2815_s1, 4  ;;  %s2026_s6 = int_to_ptr.vmem [resolvable:$true] %s2025_s6 }
  0x2a   :  { %2553 = vmatpush3.bf16.msra.mxu0 %v2550_v3  ;;  %v677_v13 = vld [vmem:[#allocation5 + $0x80] sm:$0xff]  ;;  %v45_v18 = vld [vmem:[#allocation2 + $0x28] sm:$0xff]  ;;  %v46_v19 = vld [vmem:[#allocation2 + $0x30] sm:$0xff]  ;;  %s2780_s7 = scalar_lea.vmem %s2026_s6, 128  ;;  %p2785_p3 = scmp.lt.s32.totalorder %s2026_s6, %s2026_s6 }
  0x2b   :  { %2555 = vmatprep.subr.bf16.mxu0 %v2554_v6  ;;  %v2570_v14 = vpack.c.bf16 %v677_v13, %v676_v12  ;;  %v44_v17 = vld [vmem:[#allocation2 + $0x20] sm:$0xff]  ;;  %v405_v20 = vld [vmem:[#allocation5 + $0x30] sm:$0xff]  ;;  %v406_v21 = vld [vmem:[#allocation5 + $0x38] sm:$0xff]  ;;  %p2781_p2 = scmp.ne.s32.totalorder %s2026_s6, %s2780_s7  ;;  %p2786_p4 = scmp.lt.s32.totalorder %s2780_s7, %s2780_s7 }
  0x2c   :  { %v2562_v22 = vpack.c.bf16 %v406_v21, %v405_v20  ;;  %v520_v23 = vld [vmem:[#allocation5 + $0x40] sm:$0xff]  ;;  %v521_v24 = vld [vmem:[#allocation5 + $0x48] sm:$0xff]  ;;  %v47_v26 = vld [vmem:[#allocation2 + $0x38] sm:$0xff] }
  0x2d   :  { %2276 = vmatmul.mubr.msk.f32.vlgmr.msra.gmra.mrb[0].mxu0 %vm52_vm0, %v40_v8  ;;  %2571 = vmatprep.subr.bf16.mxu1 %v2570_v14  ;;  %v2566_v25 = vpack.c.bf16 %v521_v24, %v520_v23  ;;  %v678_v27 = vld [vmem:[#allocation5 + $0x88] sm:$0xff]  ;;  %v679_v28 = vld [vmem:[#allocation5 + $0x90] sm:$0xff]  ;;  %v672_v30 = vld [vmem:[#allocation5 + $0x58] sm:$0xff]  ;;  %p2787_p5 = por %p2786_p4, %p2785_p3 }
  0x2e   :  { %2557 = vmatpush3.bf16.msra.mxu0 %v2554_v6  ;;  %2278 = vmatprep.mubr.msk.f32.mxu0 %vm52_vm0, %v41_v10  ;;  %v2574_v29 = vpack.c.bf16 %v679_v28, %v678_v27  ;;  %v673_v31 = vld [vmem:[#allocation5 + $0x60] sm:$0xff]  ;;  %v1310_v34 = vld [vmem:[#allocation5 + $0x128] sm:$0xff]  ;;  %v1311_v37 = vld [vmem:[#allocation5 + $0x130] sm:$0xff] }
  0x2f   :  { %2559 = vmatprep.subr.bf16.mxu0 %v2558_v11  ;;  %2573 = vmatpush3.bf16.msra.mxu1 %v2570_v14  ;;  %v2578_v32 = vpack.c.bf16 %v673_v31, %v672_v30  ;;  %v1309_v33 = vld [vmem:[#allocation5 + $0x120] sm:$0xff]  ;;  %v1312_v38 = vld [vmem:[#allocation5 + $0x138] sm:$0xff]  ;;  %v2899_v40 = vld [vmem:[#allocation5 + $0x50] ss:$0 sm:$0xff]  ;;  %p2788_p6 = pnand %p2787_p5, %p2781_p2 }
  0x30   :  { %2575 = vmatprep.subr.bf16.mxu1 %v2574_v29  ;;  %v2611_v36 = vpack.c.bf16 %v1310_v34, %v1309_v33  ;;  %v2614_v39 = vpack.c.bf16 %v1312_v38, %v1311_v37  ;;  %v674_v45 = vld [vmem:[#allocation5 + $0x68] sm:$0xff]  ;;  %v675_v46 = vld [vmem:[#allocation5 + $0x70] sm:$0xff]  ;;  %v914_v55 = vld [vmem:[#allocation5 + $0x98] sm:$0xff] }
  0x31   :  { %2279 = vmatmul.mubr.msk.f32.gmra.mrb[2].mxu0 %vm52_vm0, %v42_v15  ;;  %v2582_v52 = vpack.c.bf16 %v675_v46, %v674_v45  ;;  %v915_v56 = vld [vmem:[#allocation5 + $0xa0] sm:$0xff]  ;;  %v916_v13 = vld [vmem:[#allocation5 + $0xa8] sm:$0xff]  ;;  %v917_v14 = vld [vmem:[#allocation5 + $0xb0] sm:$0xff] }
  0x32   :  { %2281 = vmatprep.mubr.msk.f32.mxu0 %vm52_vm0, %v43_v16  ;;  %v2586_v63 = vpack.c.bf16 %v915_v56, %v914_v55  ;;  %v1037_v20 = vld [vmem:[#allocation5 + $0xd0] sm:$0xff]  ;;  %v1152_v23 = vld [vmem:[#allocation5 + $0xe0] sm:$0xff]  ;;  %v1153_v28 = vld [vmem:[#allocation5 + $0xe8] sm:$0xff] }
  0x33   :  { %2577 = vmatpush3.bf16.msra.mxu1 %v2574_v29  ;;  %v1154_v29 = vld [vmem:[#allocation5 + $0xf0] sm:$0xff]  ;;  %v1305_v31 = vld [vmem:[#allocation5 + $0x100] sm:$0xff]  ;;  %v2995_v38 = vld [vmem:[#allocation5 + $0xf8] ss:$0 sm:$0xff] }
  0x34   :  { %2579 = vmatprep.subr.bf16.mxu1 %v2578_v32  ;;  %v2606_v30 = vpack.c.bf16 %v1154_v29, %v1153_v28  ;;  %v1307_v34 = vld [vmem:[#allocation5 + $0x110] sm:$0xff]  ;;  %v1538_v45 = vld [vmem:[#allocation5 + $0x168] sm:$0xff] }
  0x35   :  { %2282 = vmatmul.mubr.msk.f32.gmra.mrb[4].mxu0 %vm52_vm0, %v44_v17  ;;  %v1539_v56 = vld [vmem:[#allocation5 + $0x170] sm:$0xff] }
  0x36   :  { %2284 = vmatprep.mubr.msk.f32.mxu0 %vm52_vm0, %v45_v18 }
  0x39   :  { %2285 = vmatmul.mubr.msk.f32.gmra.mrb[6].mxu0 %vm52_vm0, %v46_v19 }
  0x3a   :  { %2291 = vmatprep.mubr.f32.mxu0 %v2812_v0 }
  0x3d   :  { %2292 = vmatmul.mubr.f32.vlgmr.msra.gmra.mrb[0].mxu0 %v2812_v0 }
  0x3e   :  { %2561 = vmatpush3.bf16.msra.mxu0 %v2558_v11  ;;  %2294 = vmatprep.mubr.msk.f32.mxu0 %vm52_vm0, %v40_v8 }
  0x3f   :  { %2563 = vmatprep.subr.bf16.mxu0 %v2562_v22 }
  0x41   :  { %2295 = vmatmul.mubr.msk.f32.gmra.mrb[2].mxu0 %vm52_vm0, %v41_v10 }
  0x42   :  { %2297 = vmatprep.mubr.msk.f32.mxu0 %vm52_vm0, %v42_v15 }
  0x45   :  { %2298 = vmatmul.mubr.msk.f32.gmra.mrb[4].mxu0 %vm52_vm0, %v43_v16 }
  0x46   :  { %2300 = vmatprep.mubr.msk.f32.mxu0 %vm52_vm0, %v44_v17 }
  0x49   :  { %2301 = vmatmul.mubr.msk.f32.gmra.mrb[6].mxu0 %vm52_vm0, %v45_v18 }
  0x4a   :  { %2307 = vmatprep.mubr.msk.f32.mxu0 %vm52_vm0, %v40_v8 }
  0x4d   :  { %2308 = vmatmul.mubr.msk.f32.vlgmr.msra.gmra.mrb[0].mxu0 %vm52_vm0, %v41_v10 }
  0x4e   :  { %2565 = vmatpush3.bf16.msra.mxu0 %v2562_v22  ;;  %2310 = vmatprep.mubr.msk.f32.mxu0 %vm52_vm0, %v42_v15  ;;  %v1151_v22 = vld [vmem:[#allocation5 + $0xd8] sm:$0xff] }
  0x4f   :  { %2567 = vmatprep.subr.bf16.mxu0 %v2566_v25  ;;  %v2602_v24 = vpack.c.bf16 %v1152_v23, %v1151_v22  ;;  %v1771_v22 = vld [vmem:[#allocation5 + $0x1c0] sm:$0xff]  ;;  %v1772_v23 = vld [vmem:[#allocation5 + $0x1c8] sm:$0xff] }
  0x50   :  { %v2647_v28 = vpack.c.bf16 %v1772_v23, %v1771_v22 }
  0x51   :  { %2311 = vmatmul.mubr.msk.f32.gmra.mrb[2].mxu0 %vm52_vm0, %v43_v16 }
  0x52   :  { %2313 = vmatprep.mubr.msk.f32.mxu0 %vm52_vm0, %v44_v17 }
  0x55   :  { %2314 = vmatmul.mubr.msk.f32.gmra.mrb[4].mxu0 %vm52_vm0, %v45_v18 }
  0x56   :  { %2316 = vmatprep.mubr.msk.f32.mxu0 %vm52_vm0, %v46_v19 }
  0x59   :  { %2317 = vmatmul.mubr.msk.f32.gmra.mrb[6].mxu0 %vm52_vm0, %v47_v26 }
  0x5a   :  { %2323 = vmatprep.mubr.msk.f32.mxu0 %vm52_vm0, %v41_v10 }
  0x5d   :  { %2324 = vmatmul.mubr.msk.f32.vlgmr.msra.gmra.mrb[0].mxu0 %vm52_vm0, %v42_v15 }
  0x5e   :  { %2569 = vmatpush3.bf16.msra.mxu0 %v2566_v25  ;;  %2326 = vmatprep.mubr.msk.f32.mxu0 %vm52_vm0, %v43_v16 }
  0x5f   :  { %2610 = vmatprep.subr.bf16.mxu0 %v2813_v35 }
  0x61   :  { %2327 = vmatmul.mubr.msk.f32.gmra.mrb[2].mxu0 %vm52_vm0, %v44_v17 }
  0x62   :  { %2329 = vmatprep.mubr.msk.f32.mxu0 %vm52_vm0, %v45_v18 }
  0x65   :  { %2330 = vmatmul.mubr.msk.f32.gmra.mrb[4].mxu0 %vm52_vm0, %v46_v19 }
  0x66   :  { %2332 = vmatprep.mubr.msk.f32.mxu0 %vm52_vm0, %v47_v26 }
  0x69   :  { %2333 = vmatmul.mubr.f32.gmra.mrb[6].mxu0 %v2812_v0 }
  0x6a   :  { %2339 = vmatprep.mubr.msk.f32.mxu0 %vm52_vm0, %v42_v15  ;;  %v2590_v15 = vpack.c.bf16 %v917_v14, %v916_v13 }
  0x6d   :  { %2340 = vmatmul.mubr.msk.f32.vlgmr.msra.gmra.mrb[0].mxu0 %vm52_vm0, %v43_v16  ;;  %v1034_v16 = vld [vmem:[#allocation5 + $0xb8] sm:$0xff] }
  0x6e   :  { %2342 = vmatprep.mubr.msk.f32.mxu0 %vm52_vm0, %v44_v17  ;;  %2612 = vmatpush3.bf16.msra.mxu0 %v2611_v36  ;;  %v1035_v17 = vld [vmem:[#allocation5 + $0xc0] sm:$0xff]  ;;  %v1308_v36 = vld [vmem:[#allocation5 + $0x118] sm:$0xff] }
  0x6f   :  { %2613 = vmatprep.subr.bf16.mxu0 %v2813_v35  ;;  %v2620_v37 = vpack.c.bf16 %v1308_v36, %v1307_v34  ;;  %v1851_v34 = vld [vmem:[#allocation5 + $0x1f0] sm:$0xff]  ;;  %v1852_v36 = vld [vmem:[#allocation5 + $0x1f8] sm:$0xff] }
  0x71   :  { %2343 = vmatmul.mubr.msk.f32.gmra.mrb[2].mxu0 %vm52_vm0, %v45_v18  ;;  %v2594_v18 = vpack.c.bf16 %v1035_v17, %v1034_v16  ;;  %v1695_v16 = vld [vmem:[#allocation5 + $0x1b0] sm:$0xff]  ;;  %v1696_v17 = vld [vmem:[#allocation5 + $0x1b8] sm:$0xff] }
  0x72   :  { %2345 = vmatprep.mubr.msk.f32.mxu0 %vm52_vm0, %v46_v19  ;;  %2615 = vmatpush3.bf16.msra.mxu0 %v2614_v39  ;;  %v1036_v19 = vld [vmem:[#allocation5 + $0xc8] sm:$0xff] }
  0x73   :  { %2622 = vmatprep.subr.bf16.mxu0 %v2813_v35  ;;  %v2598_v21 = vpack.c.bf16 %v1037_v20, %v1036_v19 }
  0x75   :  { %2346 = vmatmul.mubr.msk.f32.gmra.mrb[4].mxu0 %vm52_vm0, %v47_v26 }
  0x76   :  { %2348 = vmatprep.mubr.f32.mxu0 %v2812_v0 }
  0x79   :  { %2349 = vmatmul.mubr.f32.gmra.mrb[6].mxu0 %v2812_v0 }
  0x7a   :  { %2459 = vmatprep.mubr.msk.f32.mxu0 %vm2814_vm10, %v2812_v0 }
 0x140   :  { %v2341_v41 = vpop.f32.mrb[0].mxu0 }
 0x141   :  { %v641_v42 = vadd.f32 %v2341_v41, %v2899_v40  ;;  %v588_v43 = vpop.f32.mrb[1].mxu0  ;;  %v1460_v41 = vld [vmem:[#allocation5 + $0x148] sm:$0xff] }
 0x142   :  { %v640_v44 = vadd.f32 %v2899_v40, %v588_v43 }
 0x143   :  { %v657_v47 = vmul.f32 0.2, %v641_v42  ;;  %vm649_vm1 = vcmp.gt.f32.partialorder %v641_v42, 0.0 }
 0x144   :  { %vm648_vm2 = vcmp.gt.f32.partialorder %v640_v44, 0.0  ;;  %v656_v48 = vmul.f32 0.2, %v640_v44  ;;  %v2344_v49 = vpop.f32.mrb[2].mxu0 }
 0x145   :  { %v643_v50 = vadd.f32 %v2344_v49, %v2899_v40  ;;  %v598_v51 = vpop.f32.mrb[3].mxu0  ;;  %v2906_v58 = vsel %vm649_vm1, %v641_v42, %v657_v47 }
 0x146   :  { %v642_v53 = vadd.f32 %v2899_v40, %v598_v51  ;;  %v664_v54 = vsel %vm648_vm2, %v640_v44, %v656_v48  ;;  %v1537_v44 = vld [vmem:[#allocation5 + $0x160] sm:$0xff] }
 0x147   :  { %v659_v57 = vmul.f32 0.2, %v643_v50  ;;  %2360 = vmatmul.mubr.msk.f32.vlgmr.msra.gmra.mrb[0].mxu1 %vm680_vm3, %v664_v54  ;;  %vm651_vm4 = vcmp.gt.f32.partialorder %v643_v50, 0.0  ;;  %v2629_v51 = vpack.c.bf16 %v1538_v45, %v1537_v44  ;;  %v1936_v45 = vld [vmem:[#allocation5 + $0x208] sm:$0xff] }
 0x148   :  { %vm650_vm5 = vcmp.gt.f32.partialorder %v642_v53, 0.0  ;;  %v658_v59 = vmul.f32 0.2, %v642_v53  ;;  %v2347_v60 = vpop.f32.mrb[4].mxu0  ;;  %2362 = vmatprep.mubr.msk.f32.mxu1 %vm680_vm3, %v2906_v58  ;;  %2581 = vmatpush3.bf16.msra.mxu1 %v2578_v32  ;;  %v1306_v32 = vld [vmem:[#allocation5 + $0x108] sm:$0xff] }
 0x149   :  { %v645_v61 = vadd.f32 %v2347_v60, %v2899_v40  ;;  %v608_v62 = vpop.f32.mrb[5].mxu0  ;;  %2583 = vmatprep.subr.bf16.mxu1 %v2582_v52  ;;  %v2914_v3 = vsel %vm651_vm4, %v643_v50, %v659_v57  ;;  %v2617_v33 = vpack.c.bf16 %v1306_v32, %v1305_v31  ;;  %v1540_v57 = vld [vmem:[#allocation5 + $0x178] sm:$0xff] }
 0x14a   :  { %v2911_v1 = vsel %vm650_vm5, %v642_v53, %v658_v59  ;;  %v644_v2 = vadd.f32 %v2899_v40, %v608_v62  ;;  %v1462_v53 = vld [vmem:[#allocation5 + $0x158] sm:$0xff] }
 0x14b   :  { %v661_v4 = vmul.f32 0.2, %v645_v61  ;;  %2363 = vmatmul.mubr.msk.f32.gmra.mrb[2].mxu1 %vm680_vm3, %v2911_v1  ;;  %vm653_vm6 = vcmp.gt.f32.partialorder %v645_v61, 0.0  ;;  %v1774_v31 = vld [vmem:[#allocation5 + $0x1d8] sm:$0xff] }
 0x14c   :  { %vm652_vm7 = vcmp.gt.f32.partialorder %v644_v2, 0.0  ;;  %v660_v5 = vmul.f32 0.2, %v644_v2  ;;  %v2350_v6 = vpop.f32.mrb[6].mxu0  ;;  %2365 = vmatprep.mubr.msk.f32.mxu1 %vm680_vm3, %v2914_v3  ;;  %2585 = vmatpush3.bf16.msra.mxu1 %v2582_v52  ;;  %v1461_v52 = vld [vmem:[#allocation5 + $0x150] sm:$0xff] }
 0x14d   :  { %v618_v7 = vpop.f32.mrb[7].mxu0  ;;  %2587 = vmatprep.subr.bf16.mxu1 %v2586_v63  ;;  %v2923_v10 = vsel %vm653_vm6, %v645_v61, %v661_v4  ;;  %v647_v25 = vadd.f32 %v2350_v6, %v2899_v40  ;;  %v2626_v61 = vpack.c.bf16 %v1462_v53, %v1461_v52  ;;  %v1694_v6 = vld [vmem:[#allocation5 + $0x1a8] sm:$0xff] }
 0x14e   :  { %v2920_v8 = vsel %vm652_vm7, %v644_v2, %v660_v5  ;;  %v646_v9 = vadd.f32 %v2899_v40, %v618_v7  ;;  %v1459_v40 = vld [vmem:[#allocation5 + $0x140] sm:$0xff]  ;;  %v1616_v2 = vld [vmem:[#allocation5 + $0x188] sm:$0xff] }
 0x14f   :  { %2366 = vmatmul.mubr.msk.f32.gmra.mrb[4].mxu1 %vm680_vm3, %v2920_v8  ;;  %v663_v26 = vmul.f32 0.2, %v647_v25  ;;  %vm655_vm9 = vcmp.gt.f32.partialorder %v647_v25, 0.0  ;;  %v2623_v48 = vpack.c.bf16 %v1460_v41, %v1459_v40  ;;  %v1693_v5 = vld [vmem:[#allocation5 + $0x1a0] sm:$0xff]  ;;  %v2656_v41 = vpack.c.bf16 %v1852_v36, %v1851_v34 }
 0x150   :  { %vm654_vm8 = vcmp.gt.f32.partialorder %v646_v9, 0.0  ;;  %v662_v11 = vmul.f32 0.2, %v646_v9  ;;  %2368 = vmatprep.mubr.msk.f32.mxu1 %vm680_vm3, %v2923_v10 }
 0x151   :  { %v671_v27 = vsel %vm655_vm9, %v647_v25, %v663_v26  ;;  %v1849_v25 = vld [vmem:[#allocation5 + $0x1e0] sm:$0xff]  ;;  %v1850_v26 = vld [vmem:[#allocation5 + $0x1e8] sm:$0xff] }
 0x152   :  { %v2929_v12 = vsel %vm654_vm8, %v646_v9, %v662_v11  ;;  %v1617_v11 = vld [vmem:[#allocation5 + $0x190] sm:$0xff]  ;;  %v2653_v29 = vpack.c.bf16 %v1850_v26, %v1849_v25 }
 0x153   :  { %2369 = vmatmul.mubr.msk.f32.gmra.mrb[6].mxu1 %vm680_vm3, %v2929_v12 }
 0x154   :  { %2379 = vmatprep.mubr.f32.mxu1 %v2812_v0 }
 0x157   :  { %2380 = vmatmul.mubr.f32.vlgmr.msra.gmra.mrb[0].mxu1 %v2812_v0 }
 0x158   :  { %2382 = vmatprep.mubr.msk.f32.mxu1 %vm680_vm3, %v664_v54  ;;  %2589 = vmatpush3.bf16.msra.mxu1 %v2586_v63  ;;  %v2632_v63 = vpack.c.bf16 %v1540_v57, %v1539_v56 }
 0x159   :  { %2591 = vmatprep.subr.bf16.mxu1 %v2590_v15 }
 0x15b   :  { %2383 = vmatmul.mubr.msk.f32.gmra.mrb[2].mxu1 %vm680_vm3, %v2906_v58 }
 0x15c   :  { %2385 = vmatprep.mubr.msk.f32.mxu1 %vm680_vm3, %v2911_v1  ;;  %2593 = vmatpush3.bf16.msra.mxu1 %v2590_v15 }
 0x15d   :  { %2595 = vmatprep.subr.bf16.mxu1 %v2594_v18 }
 0x15f   :  { %2386 = vmatmul.mubr.msk.f32.gmra.mrb[4].mxu1 %vm680_vm3, %v2914_v3 }
 0x160   :  { %2388 = vmatprep.mubr.msk.f32.mxu1 %vm680_vm3, %v2920_v8 }
 0x163   :  { %2389 = vmatmul.mubr.msk.f32.gmra.mrb[6].mxu1 %vm680_vm3, %v2923_v10 }
 0x164   :  { %2399 = vmatprep.mubr.msk.f32.mxu1 %vm680_vm3, %v664_v54 }
 0x167   :  { %2400 = vmatmul.mubr.msk.f32.vlgmr.msra.gmra.mrb[0].mxu1 %vm680_vm3, %v2906_v58 }
 0x168   :  { %2402 = vmatprep.mubr.msk.f32.mxu1 %vm680_vm3, %v2911_v1  ;;  %2597 = vmatpush3.bf16.msra.mxu1 %v2594_v18 }
 0x169   :  { %2599 = vmatprep.subr.bf16.mxu1 %v2598_v21 }
 0x16b   :  { %2403 = vmatmul.mubr.msk.f32.gmra.mrb[2].mxu1 %vm680_vm3, %v2914_v3 }
 0x16c   :  { %2405 = vmatprep.mubr.msk.f32.mxu1 %vm680_vm3, %v2920_v8  ;;  %2601 = vmatpush3.bf16.msra.mxu1 %v2598_v21  ;;  %v2644_v21 = vpack.c.bf16 %v1696_v17, %v1695_v16 }
 0x16d   :  { %2603 = vmatprep.subr.bf16.mxu1 %v2602_v24 }
 0x16f   :  { %2406 = vmatmul.mubr.msk.f32.gmra.mrb[4].mxu1 %vm680_vm3, %v2923_v10 }
 0x170   :  { %2408 = vmatprep.mubr.msk.f32.mxu1 %vm680_vm3, %v2929_v12 }
 0x173   :  { %2409 = vmatmul.mubr.msk.f32.gmra.mrb[6].mxu1 %vm680_vm3, %v671_v27 }
 0x174   :  { %2419 = vmatprep.mubr.msk.f32.mxu1 %vm680_vm3, %v2906_v58 }
 0x177   :  { %2420 = vmatmul.mubr.msk.f32.vlgmr.msra.gmra.mrb[0].mxu1 %vm680_vm3, %v2911_v1 }
 0x178   :  { %2422 = vmatprep.mubr.msk.f32.mxu1 %vm680_vm3, %v2914_v3  ;;  %2605 = vmatpush3.bf16.msra.mxu1 %v2602_v24 }
 0x179   :  { %2607 = vmatprep.subr.bf16.mxu1 %v2606_v30 }
 0x17b   :  { %2423 = vmatmul.mubr.msk.f32.gmra.mrb[2].mxu1 %vm680_vm3, %v2920_v8 }
 0x17c   :  { %2425 = vmatprep.mubr.msk.f32.mxu1 %vm680_vm3, %v2923_v10  ;;  %2609 = vmatpush3.bf16.msra.mxu1 %v2606_v30  ;;  %v1773_v30 = vld [vmem:[#allocation5 + $0x1d0] sm:$0xff] }
 0x17d   :  { %2616 = vmatprep.subr.bf16.mxu1 %v2813_v35  ;;  %v2650_v40 = vpack.c.bf16 %v1774_v31, %v1773_v30 }
 0x17f   :  { %2426 = vmatmul.mubr.msk.f32.gmra.mrb[4].mxu1 %vm680_vm3, %v2929_v12 }
 0x180   :  { %2428 = vmatprep.mubr.msk.f32.mxu1 %vm680_vm3, %v671_v27 }
 0x183   :  { %2429 = vmatmul.mubr.f32.gmra.mrb[6].mxu1 %v2812_v0 }
 0x184   :  { %2439 = vmatprep.mubr.msk.f32.mxu1 %vm680_vm3, %v2911_v1  ;;  %v1615_v1 = vld [vmem:[#allocation5 + $0x180] sm:$0xff] }
 0x187   :  { %2440 = vmatmul.mubr.msk.f32.vlgmr.msra.gmra.mrb[0].mxu1 %vm680_vm3, %v2914_v3 }
 0x188   :  { %2442 = vmatprep.mubr.msk.f32.mxu1 %vm680_vm3, %v2920_v8  ;;  %2618 = vmatpush3.bf16.msra.mxu1 %v2617_v33  ;;  %v2635_v8 = vpack.c.bf16 %v1616_v2, %v1615_v1 }
 0x189   :  { %2619 = vmatprep.subr.bf16.mxu1 %v2813_v35 }
 0x18b   :  { %2443 = vmatmul.mubr.msk.f32.gmra.mrb[2].mxu1 %vm680_vm3, %v2923_v10  ;;  %v2641_v10 = vpack.c.bf16 %v1694_v6, %v1693_v5 }
 0x18c   :  { %2445 = vmatprep.mubr.msk.f32.mxu1 %vm680_vm3, %v2929_v12  ;;  %2621 = vmatpush3.bf16.msra.mxu1 %v2620_v37  ;;  %v1618_v12 = vld [vmem:[#allocation5 + $0x198] sm:$0xff] }
 0x18d   :  { %2628 = vmatprep.subr.bf16.mxu1 %v2813_v35  ;;  %v2638_v20 = vpack.c.bf16 %v1618_v12, %v1617_v11 }
 0x18f   :  { %2446 = vmatmul.mubr.msk.f32.gmra.mrb[4].mxu1 %vm680_vm3, %v671_v27 }
 0x190   :  { %2448 = vmatprep.mubr.f32.mxu1 %v2812_v0 }
 0x193   :  { %2449 = vmatmul.mubr.f32.gmra.mrb[6].mxu1 %v2812_v0 }
 0x194   :  { %2470 = vmatprep.mubr.msk.f32.mxu1 %vm2814_vm10, %v2812_v0 }
 0x25a   :  { %v2441_v39 = vpop.f32.mrb[0].mxu1 }
 0x25b   :  { %v1274_v42 = vadd.f32 %v2441_v39, %v2995_v38  ;;  %v1221_v43 = vpop.f32.mrb[1].mxu1 }
 0x25c   :  { %v1273_v46 = vadd.f32 %v2995_v38, %v1221_v43 }
 0x25d   :  { %vm1282_vm11 = vcmp.gt.f32.partialorder %v1274_v42, 0.0  ;;  %v1290_v47 = vmul.f32 0.2, %v1274_v42 }
 0x25e   :  { %vm1281_vm12 = vcmp.gt.f32.partialorder %v1273_v46, 0.0  ;;  %v1289_v49 = vmul.f32 0.2, %v1273_v46  ;;  %v2444_v50 = vpop.f32.mrb[2].mxu1 }
 0x25f   :  { %v1298_v54 = vsel %vm1282_vm11, %v1274_v42, %v1290_v47  ;;  %v1231_v55 = vpop.f32.mrb[3].mxu1  ;;  %v1276_v59 = vadd.f32 %v2444_v50, %v2995_v38 }
 0x260   :  { %v1297_v58 = vsel %vm1281_vm12, %v1273_v46, %v1289_v49  ;;  %v1275_v60 = vadd.f32 %v2995_v38, %v1231_v55  ;;  %2460 = vmatmul.mubr.msk.f32.vlgmr.msra.gmra.mrb[8].mxu0 %vm680_vm3, %v1298_v54  ;;  %v1937_v46 = vld [vmem:[#allocation5 + $0x210] sm:$0xff]  ;;  %v1939_v49 = vld [vmem:[#allocation5 + $0x220] sm:$0xff] }
 0x261   :  { %2624 = vmatpush3.bf16.msra.mxu0 %v2623_v48  ;;  %2471 = vmatmul.mubr.msk.f32.vlgmr.msra.gmra.mrb[8].mxu1 %vm680_vm3, %v1297_v58  ;;  %v1292_v7 = vmul.f32 0.2, %v1276_v59  ;;  %vm1284_vm14 = vcmp.gt.f32.partialorder %v1276_v59, 0.0  ;;  %v2659_v47 = vpack.c.bf16 %v1937_v46, %v1936_v45  ;;  %v1938_v48 = vld [vmem:[#allocation5 + $0x218] sm:$0xff] }
 0x262   :  { %2630 = vmatpush3.bf16.msra.mxu1 %v2629_v51  ;;  %v2447_v62 = vpop.f32.mrb[4].mxu1  ;;  %2625 = vmatprep.subr.bf16.mxu0 %v2813_v35  ;;  %v1291_v3 = vmul.f32 0.2, %v1275_v60  ;;  %vm1283_vm13 = vcmp.gt.f32.partialorder %v1275_v60, 0.0  ;;  %v2662_v50 = vpack.c.bf16 %v1939_v49, %v1938_v48 }
 0x263   :  { %v1241_v4 = vpop.f32.mrb[5].mxu1  ;;  %2631 = vmatprep.subr.bf16.mxu1 %v2813_v35  ;;  %2481 = vmatprep.mubr.msk.f32.mxu0 %vm2814_vm10, %v2812_v0  ;;  %v1300_v18 = vsel %vm1284_vm14, %v1276_v59, %v1292_v7  ;;  %v1278_v19 = vadd.f32 %v2447_v62, %v2995_v38  ;;  %v2113_v7 = vld [vmem:[#allocation5 + $0x200] ss:$0 sm:$0xff] }
 0x264   :  { %2492 = vmatprep.mubr.msk.f32.mxu1 %vm2814_vm10, %v2812_v0  ;;  %v1299_v13 = vsel %vm1283_vm13, %v1275_v60, %v1291_v3  ;;  %v1277_v14 = vadd.f32 %v2995_v38, %v1241_v4 }
 0x265   :  { %2627 = vmatpush3.bf16.msra.mxu0 %v2626_v61  ;;  %v1294_v27 = vmul.f32 0.2, %v1278_v19  ;;  %vm1286_vm0 = vcmp.gt.f32.partialorder %v1278_v19, 0.0 }
 0x266   :  { %2633 = vmatpush3.bf16.msra.mxu1 %v2632_v63  ;;  %v2450_v9 = vpop.f32.mrb[6].mxu1  ;;  %2634 = vmatprep.subr.bf16.mxu0 %v2813_v35  ;;  %v1293_v24 = vmul.f32 0.2, %v1277_v14  ;;  %vm1285_vm15 = vcmp.gt.f32.partialorder %v1277_v14, 0.0 }
 0x267   :  { %v1251_v15 = vpop.f32.mrb[7].mxu1  ;;  %2640 = vmatprep.subr.bf16.mxu1 %v2813_v35  ;;  %v1302_v37 = vsel %vm1286_vm0, %v1278_v19, %v1294_v27  ;;  %v1280_v39 = vadd.f32 %v2450_v9, %v2995_v38 }
 0x268   :  { %2482 = vmatmul.mubr.msk.f32.vlgmr.msra.gmra.mrb[10].mxu0 %vm680_vm3, %v1299_v13  ;;  %v1301_v32 = vsel %vm1285_vm15, %v1277_v14, %v1293_v24  ;;  %v1279_v33 = vadd.f32 %v2995_v38, %v1251_v15  ;;  %v2114_v13 = vld [vmem:[#allocation5 + $0x228] ss:$0 sm:$0xff] }
 0x269   :  { %2493 = vmatmul.mubr.msk.f32.vlgmr.msra.gmra.mrb[10].mxu1 %vm680_vm3, %v1300_v18  ;;  %2636 = vmatpush3.bf16.msra.mxu0 %v2635_v8  ;;  %v1296_v43 = vmul.f32 0.2, %v1280_v39  ;;  %vm1288_vm2 = vcmp.gt.f32.partialorder %v1280_v39, 0.0 }
 0x26a   :  { %2642 = vmatpush3.bf16.msra.mxu1 %v2641_v10  ;;  %2637 = vmatprep.subr.bf16.mxu0 %v2813_v35  ;;  %v1295_v42 = vmul.f32 0.2, %v1279_v33  ;;  %vm1287_vm1 = vcmp.gt.f32.partialorder %v1279_v33, 0.0 }
 0x26b   :  { %2643 = vmatprep.subr.bf16.mxu1 %v2813_v35  ;;  %2503 = vmatprep.mubr.msk.f32.mxu0 %vm2814_vm10, %v2812_v0  ;;  %v1304_v44 = vsel %vm1288_vm2, %v1280_v39, %v1296_v43 }
 0x26c   :  { %2514 = vmatprep.mubr.msk.f32.mxu1 %vm2814_vm10, %v2812_v0  ;;  %v1303_v38 = vsel %vm1287_vm1, %v1279_v33, %v1295_v42 }
 0x26d   :  { %2639 = vmatpush3.bf16.msra.mxu0 %v2638_v20 }
 0x26e   :  { %2645 = vmatpush3.bf16.msra.mxu1 %v2644_v21  ;;  %2646 = vmatprep.subr.bf16.mxu0 %v2813_v35 }
 0x26f   :  { %2652 = vmatprep.subr.bf16.mxu1 %v2813_v35 }
 0x270   :  { %2504 = vmatmul.mubr.msk.f32.vlgmr.msra.gmra.mrb[12].mxu0 %vm680_vm3, %v1301_v32 }
 0x271   :  { %2515 = vmatmul.mubr.msk.f32.vlgmr.msra.gmra.mrb[12].mxu1 %vm680_vm3, %v1302_v37  ;;  %2648 = vmatpush3.bf16.msra.mxu0 %v2647_v28 }
 0x272   :  { %2654 = vmatpush3.bf16.msra.mxu1 %v2653_v29  ;;  %2649 = vmatprep.subr.bf16.mxu0 %v2813_v35 }
 0x273   :  { %2655 = vmatprep.subr.bf16.mxu1 %v2813_v35  ;;  %2525 = vmatprep.mubr.msk.f32.mxu0 %vm2814_vm10, %v2812_v0 }
 0x274   :  { %2536 = vmatprep.mubr.msk.f32.mxu1 %vm2814_vm10, %v2812_v0 }
 0x275   :  { %2651 = vmatpush3.bf16.msra.mxu0 %v2650_v40 }
 0x276   :  { %2657 = vmatpush3.bf16.msra.mxu1 %v2656_v41  ;;  %2658 = vmatprep.subr.bf16.mxu0 %v2813_v35 }
 0x278   :  { %2526 = vmatmul.mubr.msk.f32.vlgmr.msra.gmra.mrb[14].mxu0 %vm680_vm3, %v1303_v38 }
 0x279   :  { %2537 = vmatmul.mubr.msk.f32.vlgmr.msra.gmra.mrb[14].mxu1 %vm680_vm3, %v1304_v44  ;;  %2547 = vmatprep.mubr.msk.f32.mxu0 %vm2814_vm10, %v2812_v0 }
 0x27a   :  { %2660 = vmatpush3.bf16.msra.mxu0 %v2659_v47 }
 0x27b   :  { %2661 = vmatprep.subr.bf16.mxu0 %v2813_v35 }
 0x27e   :  { %2663 = vmatpush3.bf16.msra.mxu0 %v2662_v50 }
 0x333   :  { %v1382_v51 = vpop.f32.mrb[8].mxu0 }
 0x334   :  { %v2461_v52 = vpop.f32.mrb[9].mxu0  ;;  %v1455_v53 = vpop.f32.mrb[8].mxu1 }
 0x335   :  { %v1456_v54 = vadd.f32 %v1455_v53, %v1382_v51  ;;  %v2472_v55 = vpop.f32.mrb[9].mxu1 }
 0x33b   :  { %v1532_v56 = vpop.f32.mrb[10].mxu0 }
 0x33c   :  { %v1536_v57 = vadd.f32 %v1532_v56, %v1456_v54  ;;  %v2483_v58 = vpop.f32.mrb[11].mxu0  ;;  %v1610_v59 = vpop.f32.mrb[10].mxu1 }
 0x33d   :  { %v2494_v0 = vpop.f32.mrb[11].mxu1 }
 0x33e   :  { %v1614_v60 = vadd.f32 %v1610_v59, %v1536_v57 }
 0x343   :  { %v1688_v61 = vpop.f32.mrb[12].mxu0 }
 0x344   :  { %v1692_v62 = vadd.f32 %v1688_v61, %v1614_v60  ;;  %v2505_v63 = vpop.f32.mrb[13].mxu0  ;;  %v1766_v1 = vpop.f32.mrb[12].mxu1 }
 0x345   :  { %v2516_v35 = vpop.f32.mrb[13].mxu1 }
 0x346   :  { %v1770_v2 = vadd.f32 %v1766_v1, %v1692_v62 }
 0x34b   :  { %v1844_v3 = vpop.f32.mrb[14].mxu0 }
 0x34c   :  { %v1848_v4 = vadd.f32 %v1844_v3, %v1770_v2  ;;  %v2527_v5 = vpop.f32.mrb[15].mxu0  ;;  %v1922_v6 = vpop.f32.mrb[14].mxu1 }
 0x34d   :  { %v2538_v8 = vpop.f32.mrb[15].mxu1 }
 0x34e   :  { %v1926_v9 = vadd.f32 %v1922_v6, %v1848_v4 }
 0x350   :  { %v1932_v10 = vadd.f32 %v2113_v7, %v1926_v9 }
 0x352   :  { %vm1933_vm4 = vcmp.gt.f32.partialorder %v1932_v10, 0.0  ;;  %v1934_v11 = vmul.f32 0.2, %v1932_v10 }
 0x354   :  { %v1935_v12 = vsel %vm1933_vm4, %v1932_v10, %v1934_v11 }
 0x355   :  { %2548 = vmatmul.mubr.msk.f32.vlgmr.msra.gmra.mrb[16].mxu0 %vm680_vm3, %v1935_v12 }
 0x428   :  { %v2014_v14 = vpop.f32.mrb[16].mxu0 }
 0x429   :  { %v2015_v15 = vadd.f32 %v2114_v13, %v2014_v14  ;;  %v2549_v16 = vpop.f32.mrb[17].mxu0 }
 0x42b   :  { %2018 = vst [vmem:[#allocation7] sm:$0xff] %v2015_v15 }
 0x42c   :  { %2791 = shalt.err (!%p2788_p6)
}
 0x42d   :  { %s2792_s10 = scalar_lea.hbm %s3054_s2, 128 }
 0x42e   :  { %p2793_p7 = scmp.ne.s32.totalorder %s3054_s2, %s2792_s10  ;;  %p2796_p8 = scmp.lt.u32.totalorder %s2792_s10, %s3054_s2 }
 0x430   :  { %p2798_p9 = pnand %p2796_p8, %p2793_p7 }
 0x432   :  { %2801 = shalt.err (!%p2798_p9)
}
 0x433   :  { %2028 = dma.vmem_to_hbm [thread:$0]  %s2026_s6, 128, %s3054_s2, [#allocation4]  }
 0x434   :  { %2806 = dma.done.wait [#allocation4], 128  }
 0x435   :  { %2807 = vsyncadd [#allocation4], 4294967168 }
 0x436   :  { %2032 = vsyncpa [#allocation3], 1 }
 0x437   :  { %2033 = vsyncpa [#allocation6], 1 }
 0x438   :  { %2034 = vsyncpa [#allocation4], 1 }

</bundles_post_ra>
